<compile_context>
chip_gen: v5e
topology: v5e:2x2
jax: 0.10.0
libtpu: 0.0.40
codegen_flags: <defaults>
</compile_context>

<pallas_src>
import functools

import jax
import jax.numpy as jnp
from jax.experimental import pallas as pl
from jax.experimental.pallas import tpu as pltpu

# Layer sizes from the module __init__ (input size is a constructor arg).
HIDDEN_SIZES = (400, 200, 100, 75, 50, 10)
LANE = 128
_SUBLANE_BF16 = 16  # one bf16 vreg packs (16, 128)


def _round_up(x, m):
    return ((x + m - 1) // m) * m


# ----------------------------------------------------------------------------
# Build-time parameter packing (run ONCE, not per forward call).
# ----------------------------------------------------------------------------
def pack_params(params, input_dim):
    """Cast weights to bf16, zero-pad every feature dim to a multiple of 128,
    and concatenate everything into ONE weight buffer + ONE bias buffer.

    params: list of (W, b) with W=(in, out) [i.e. torch's weight transposed],
            b=(out,) or (1, out) float32.
    Returns (w_packed, b_packed, layers) where `layers` is a static tuple of
    (weight_row_offset, contraction_dim, padded_out_dim, bias_lane_offset).
    """
    out_pad = [_round_up(n, LANE) for n in HIDDEN_SIZES]   # 512,256,128,128,128,128
    in_pad = [input_dim] + out_pad[:-1]                    # contraction dims in-kernel
    wmax = max(out_pad)                                    # 512

    # Row offsets, 16-aligned so every weight starts on a bf16 sublane tile.
    row_offs, r = [], 0
    for k in in_pad:
        row_offs.append(r)
        r += _round_up(k, _SUBLANE_BF16)
    total_rows = _round_up(r, _SUBLANE_BF16)

    # Bias lane offsets (all multiples of 128).
    lane_offs, c = [], 0
    for n in out_pad:
        lane_offs.append(c)
        c += n
    total_lanes = c                                        # 1280

    w_packed = jnp.zeros((total_rows, wmax), jnp.bfloat16)
    b_packed = jnp.zeros((1, total_lanes), jnp.float32)
    layers = []
    for i, (w, b) in enumerate(params):
        w = jnp.asarray(w, jnp.float32)
        b = jnp.asarray(b, jnp.float32).reshape(-1)        # torch bias is (out,)
        k_real, n_real = w.shape
        w_packed = w_packed.at[row_offs[i]:row_offs[i] + k_real, :n_real].set(
            w.astype(jnp.bfloat16))
        b_packed = b_packed.at[0, lane_offs[i]:lane_offs[i] + n_real].set(b)
        layers.append((row_offs[i], in_pad[i], out_pad[i], lane_offs[i]))
    return w_packed, b_packed, tuple(layers)


# ----------------------------------------------------------------------------
# Kernel
# ----------------------------------------------------------------------------
def _make_kernel(tb, nsub, layers):
    """Fused 6-layer MLP on one (tb, d_in) batch tile, unrolled over `nsub`
    independent row sub-blocks so MXU matmuls of one sub-block overlap the
    VPU bias+ReLU+cast epilogue of the other."""
    n_layers = len(layers)
    sub = tb // nsub

    def kernel(x_ref, w_ref, b_ref, out_ref):
        for j in range(nsub):                      # fully unrolled (static)
            # astype is a no-op if the caller already feeds bf16 activations.
            h = x_ref[pl.ds(j * sub, sub), :].astype(jnp.bfloat16)
            for li, (r0, k, n, c0) in enumerate(layers):
                w = w_ref[pl.ds(r0, k), pl.ds(0, n)]        # static slice of packed buf
                y = jnp.dot(h, w, preferred_element_type=jnp.float32)
                y = y + b_ref[:, pl.ds(c0, n)]
                if li + 1 < n_layers:
                    h = jnp.maximum(y, 0.0).astype(jnp.bfloat16)
                else:
                    # bf16 logits, 128-lane dense -> unmasked stores, half the
                    # padded f32 write bytes.  Padded lanes are exactly 0.
                    out_ref[pl.ds(j * sub, sub), :] = y.astype(out_ref.dtype)

    return kernel


def _choose_batch_tile(batch, d_in, w_rows, x_itemsize):
    """Largest batch tile whose double-buffered working set stays comfortably
    under the smallest scoped-VMEM default (v5e: 16 MiB)."""
    budget = 12 * 1024 * 1024
    fixed = 2 * (w_rows * 512 * 2) + 2 * (1280 * 4)     # packed weights/biases (x2 buffers)
    per_row = (2 * d_in * x_itemsize                    # x tile, double-buffered
               + 2 * 128 * 2                            # bf16 out tile, double-buffered
               + 6 * 1024)                              # in-kernel activation temporaries
    tb = (budget - fixed) // per_row
    tb = max(LANE, min(1024, (tb // LANE) * LANE))
    # Small batches: a single 8-aligned tile is enough.
    return min(tb, _round_up(batch, 8))


def classify_forward(x, w_packed, b_packed, *, layers,
                     n_classes=HIDDEN_SIZES[-1]):
    """x: (B, D_in) f32 (or bf16). Returns (B, 10) f32 pre-softmax logits."""
    batch, d_in = x.shape
    tb = _choose_batch_tile(batch, d_in, w_packed.shape[0],
                            jnp.dtype(x.dtype).itemsize)
    b_pad = _round_up(batch, tb)
    if b_pad != batch:
        x = jnp.pad(x, ((0, b_pad - batch), (0, 0)))
    grid = (b_pad // tb,)
    nsub = 2 if tb >= 256 else 1
    out_w = _round_up(n_classes, LANE)                  # 128

    out = pl.pallas_call(
        _make_kernel(tb, nsub, layers),
        out_shape=jax.ShapeDtypeStruct((b_pad, out_w), jnp.bfloat16),
        grid=grid,
        in_specs=[
            pl.BlockSpec((tb, d_in), lambda i: (i, 0)),
            # Single packed weight / bias buffers; constant index_map ->
            # DMA'd once, VMEM-resident across all batch-grid steps.
            pl.BlockSpec(w_packed.shape, lambda i: (0, 0)),
            pl.BlockSpec(b_packed.shape, lambda i: (0, 0)),
        ],
        out_specs=pl.BlockSpec((tb, out_w), lambda i: (i, 0)),
        compiler_params=pltpu.CompilerParams(
            dimension_semantics=("parallel",)),
    )(x, w_packed, b_packed)

    return out[:batch, :n_classes].astype(jnp.float32)


# ----------------------------------------------------------------------------
# Reference / test harness
# ----------------------------------------------------------------------------
def init_params(key, input_dim):
    """Deterministic init mimicking torch.nn.Linear (uniform +-1/sqrt(fan_in)).
    Weights are stored as (in, out) — i.e. torch's weight transposed — and
    biases as (out,), matching torch's bias convention."""
    dims = (input_dim,) + HIDDEN_SIZES
    params = []
    for i in range(len(dims) - 1):
        fan_in, fan_out = dims[i], dims[i + 1]
        key, kw, kb = jax.random.split(key, 3)
        bound = 1.0 / (fan_in ** 0.5)
        w = jax.random.uniform(kw, (fan_in, fan_out), jnp.float32, -bound, bound)
        b = jax.random.uniform(kb, (fan_out,), jnp.float32, -bound, bound)
        params.append((w, b))
    return params


def reference_forward(x, params):
    """Pure-JAX reference mirroring the kernel numerics: bf16 operands,
    f32 MXU accumulation, bf16 logits (cast back to f32)."""
    h = x.astype(jnp.bfloat16)
    for i, (w, b) in enumerate(params):
        y = jnp.dot(h, w.astype(jnp.bfloat16),
                    preferred_element_type=jnp.float32) + b.reshape(1, -1)
        if i < len(params) - 1:
            h = jnp.maximum(y, 0.0).astype(jnp.bfloat16)
        else:
            h = y.astype(jnp.bfloat16).astype(jnp.float32)
    return h


if __name__ == "__main__":
    key = jax.random.PRNGKey(0)
    batch, input_dim = 8, 64

    k_in, k_param = jax.random.split(key)
    x = jax.random.normal(k_in, (batch, input_dim), jnp.float32)
    params = init_params(k_param, input_dim)

    # Build-time packing (hoisted out of the per-call path).
    w_packed, b_packed, layers = pack_params(params, input_dim)

    fwd = jax.jit(functools.partial(classify_forward, layers=layers))
    out = jax.block_until_ready(fwd(x, w_packed, b_packed))

    ref = reference_forward(x, params)
    assert out.shape == (batch, HIDDEN_SIZES[-1])
    max_err = float(jnp.max(jnp.abs(out - ref)))
    assert jnp.allclose(out, ref, atol=2e-2, rtol=2e-2), max_err

    print("KERNEL_OK")
</pallas_src>

<mosaic_0001>
module attributes {stable_mosaic.version = 11 : i64} {
  func.func @kernel(%arg0: i32, %arg1: memref<8x64xf32, #tpu.memory_space<vmem>>, %arg2: memref<1216x512xbf16, #tpu.memory_space<vmem>>, %arg3: memref<1x1280xf32, #tpu.memory_space<vmem>>, %arg4: memref<8x128xbf16, #tpu.memory_space<vmem>>) attributes {dimension_semantics = [#tpu.dimension_semantics<parallel>], iteration_bounds = array<i64: 1>, scalar_prefetch = 0 : i64, scratch_operands = 0 : i64, tpu.core_type = #tpu.core_type<tc>, window_params = [{transform_indices = @transform_0, window_bounds = array<i64: 8, 64>}, {pipeline_mode = #tpu.pipeline_mode<synchronous>, transform_indices = @transform_1, window_bounds = array<i64: 1216, 512>}, {pipeline_mode = #tpu.pipeline_mode<synchronous>, transform_indices = @transform_2, window_bounds = array<i64: 1, 1280>}, {transform_indices = @transform_3, window_bounds = array<i64: 8, 128>}]} {
    %c0 = arith.constant 0 : index
    %c0_0 = arith.constant 0 : index
    %0 = vector.load %arg1[%c0, %c0_0] : memref<8x64xf32, #tpu.memory_space<vmem>>, vector<8x64xf32>
    %1 = arith.truncf %0 : vector<8x64xf32> to vector<8x64xbf16>
    %c0_1 = arith.constant 0 : index
    %c0_2 = arith.constant 0 : index
    %2 = vector.load %arg2[%c0_1, %c0_2] : memref<1216x512xbf16, #tpu.memory_space<vmem>>, vector<64x512xbf16>
    %cst = arith.constant dense<0.000000e+00> : vector<8x512xf32>
    %3 = tpu.matmul %1, %2, %cst {dimension_numbers = #tpu.dot_dimension_numbers<[1], [0], [0], [1], [0, 0, 1, 1], [], []>} : vector<8x64xbf16>, vector<64x512xbf16>, vector<8x512xf32> -> vector<8x512xf32>
    %c0_3 = arith.constant 0 : index
    %c0_4 = arith.constant 0 : index
    %4 = vector.load %arg3[%c0_3, %c0_4] : memref<1x1280xf32, #tpu.memory_space<vmem>>, vector<1x512xf32>
    %5 = vector.broadcast %4 : vector<1x512xf32> to vector<8x512xf32>
    %6 = arith.addf %3, %5 : vector<8x512xf32>
    %cst_5 = arith.constant 0.000000e+00 : f32
    %7 = vector.broadcast %cst_5 : f32 to vector<8x512xf32>
    %8 = arith.maximumf %6, %7 : vector<8x512xf32>
    %9 = arith.truncf %8 : vector<8x512xf32> to vector<8x512xbf16>
    %c64 = arith.constant 64 : index
    %c0_6 = arith.constant 0 : index
    %10 = vector.load %arg2[%c64, %c0_6] : memref<1216x512xbf16, #tpu.memory_space<vmem>>, vector<512x256xbf16>
    %cst_7 = arith.constant dense<0.000000e+00> : vector<8x256xf32>
    %11 = tpu.matmul %9, %10, %cst_7 {dimension_numbers = #tpu.dot_dimension_numbers<[1], [0], [0], [1], [0, 0, 1, 1], [], []>} : vector<8x512xbf16>, vector<512x256xbf16>, vector<8x256xf32> -> vector<8x256xf32>
    %c0_8 = arith.constant 0 : index
    %c512 = arith.constant 512 : index
    %12 = vector.load %arg3[%c0_8, %c512] : memref<1x1280xf32, #tpu.memory_space<vmem>>, vector<1x256xf32>
    %13 = vector.broadcast %12 : vector<1x256xf32> to vector<8x256xf32>
    %14 = arith.addf %11, %13 : vector<8x256xf32>
    %cst_9 = arith.constant 0.000000e+00 : f32
    %15 = vector.broadcast %cst_9 : f32 to vector<8x256xf32>
    %16 = arith.maximumf %14, %15 : vector<8x256xf32>
    %17 = arith.truncf %16 : vector<8x256xf32> to vector<8x256xbf16>
    %c576 = arith.constant 576 : index
    %c0_10 = arith.constant 0 : index
    %18 = vector.load %arg2[%c576, %c0_10] : memref<1216x512xbf16, #tpu.memory_space<vmem>>, vector<256x128xbf16>
    %cst_11 = arith.constant dense<0.000000e+00> : vector<8x128xf32>
    %19 = tpu.matmul %17, %18, %cst_11 {dimension_numbers = #tpu.dot_dimension_numbers<[1], [0], [0], [1], [0, 0, 1, 1], [], []>} : vector<8x256xbf16>, vector<256x128xbf16>, vector<8x128xf32> -> vector<8x128xf32>
    %c0_12 = arith.constant 0 : index
    %c768 = arith.constant 768 : index
    %20 = vector.load %arg3[%c0_12, %c768] : memref<1x1280xf32, #tpu.memory_space<vmem>>, vector<1x128xf32>
    %21 = vector.broadcast %20 : vector<1x128xf32> to vector<8x128xf32>
    %22 = arith.addf %19, %21 : vector<8x128xf32>
    %cst_13 = arith.constant 0.000000e+00 : f32
    %23 = vector.broadcast %cst_13 : f32 to vector<8x128xf32>
    %24 = arith.maximumf %22, %23 : vector<8x128xf32>
    %25 = arith.truncf %24 : vector<8x128xf32> to vector<8x128xbf16>
    %c832 = arith.constant 832 : index
    %c0_14 = arith.constant 0 : index
    %26 = vector.load %arg2[%c832, %c0_14] : memref<1216x512xbf16, #tpu.memory_space<vmem>>, vector<128x128xbf16>
    %cst_15 = arith.constant dense<0.000000e+00> : vector<8x128xf32>
    %27 = tpu.matmul %25, %26, %cst_15 {dimension_numbers = #tpu.dot_dimension_numbers<[1], [0], [0], [1], [0, 0, 1, 1], [], []>} : vector<8x128xbf16>, vector<128x128xbf16>, vector<8x128xf32> -> vector<8x128xf32>
    %c0_16 = arith.constant 0 : index
    %c896 = arith.constant 896 : index
    %28 = vector.load %arg3[%c0_16, %c896] : memref<1x1280xf32, #tpu.memory_space<vmem>>, vector<1x128xf32>
    %29 = vector.broadcast %28 : vector<1x128xf32> to vector<8x128xf32>
    %30 = arith.addf %27, %29 : vector<8x128xf32>
    %cst_17 = arith.constant 0.000000e+00 : f32
    %31 = vector.broadcast %cst_17 : f32 to vector<8x128xf32>
    %32 = arith.maximumf %30, %31 : vector<8x128xf32>
    %33 = arith.truncf %32 : vector<8x128xf32> to vector<8x128xbf16>
    %c960 = arith.constant 960 : index
    %c0_18 = arith.constant 0 : index
    %34 = vector.load %arg2[%c960, %c0_18] : memref<1216x512xbf16, #tpu.memory_space<vmem>>, vector<128x128xbf16>
    %cst_19 = arith.constant dense<0.000000e+00> : vector<8x128xf32>
    %35 = tpu.matmul %33, %34, %cst_19 {dimension_numbers = #tpu.dot_dimension_numbers<[1], [0], [0], [1], [0, 0, 1, 1], [], []>} : vector<8x128xbf16>, vector<128x128xbf16>, vector<8x128xf32> -> vector<8x128xf32>
    %c0_20 = arith.constant 0 : index
    %c1024 = arith.constant 1024 : index
    %36 = vector.load %arg3[%c0_20, %c1024] : memref<1x1280xf32, #tpu.memory_space<vmem>>, vector<1x128xf32>
    %37 = vector.broadcast %36 : vector<1x128xf32> to vector<8x128xf32>
    %38 = arith.addf %35, %37 : vector<8x128xf32>
    %cst_21 = arith.constant 0.000000e+00 : f32
    %39 = vector.broadcast %cst_21 : f32 to vector<8x128xf32>
    %40 = arith.maximumf %38, %39 : vector<8x128xf32>
    %41 = arith.truncf %40 : vector<8x128xf32> to vector<8x128xbf16>
    %c1088 = arith.constant 1088 : index
    %c0_22 = arith.constant 0 : index
    %42 = vector.load %arg2[%c1088, %c0_22] : memref<1216x512xbf16, #tpu.memory_space<vmem>>, vector<128x128xbf16>
    %cst_23 = arith.constant dense<0.000000e+00> : vector<8x128xf32>
    %43 = tpu.matmul %41, %42, %cst_23 {dimension_numbers = #tpu.dot_dimension_numbers<[1], [0], [0], [1], [0, 0, 1, 1], [], []>} : vector<8x128xbf16>, vector<128x128xbf16>, vector<8x128xf32> -> vector<8x128xf32>
    %c0_24 = arith.constant 0 : index
    %c1152 = arith.constant 1152 : index
    %44 = vector.load %arg3[%c0_24, %c1152] : memref<1x1280xf32, #tpu.memory_space<vmem>>, vector<1x128xf32>
    %45 = vector.broadcast %44 : vector<1x128xf32> to vector<8x128xf32>
    %46 = arith.addf %43, %45 : vector<8x128xf32>
    %47 = arith.truncf %46 : vector<8x128xf32> to vector<8x128xbf16>
    %c0_25 = arith.constant 0 : index
    %c0_26 = arith.constant 0 : index
    %48 = vector.load %arg4[%c0_25, %c0_26] : memref<8x128xbf16, #tpu.memory_space<vmem>>, vector<8x128xbf16>
    tpu.vector_store %arg4[%c0_25, %c0_26], %47 {strides = array<i32>} : memref<8x128xbf16, #tpu.memory_space<vmem>>, vector<8x128xbf16>,
    return
  }
  func.func @transform_0(%arg0: i32) -> (i32, i32) {
    %c0_i32 = arith.constant 0 : i32
    %c0_i32_0 = arith.constant 0 : i32
    return %arg0, %c0_i32 : i32, i32
  }
  func.func @transform_1(%arg0: i32) -> (i32, i32) {
    %c0_i32 = arith.constant 0 : i32
    %c0_i32_0 = arith.constant 0 : i32
    %c0_i32_1 = arith.constant 0 : i32
    return %c0_i32, %c0_i32_0 : i32, i32
  }
  func.func @transform_2(%arg0: i32) -> (i32, i32) {
    %c0_i32 = arith.constant 0 : i32
    %c0_i32_0 = arith.constant 0 : i32
    %c0_i32_1 = arith.constant 0 : i32
    return %c0_i32, %c0_i32_0 : i32, i32
  }
  func.func @transform_3(%arg0: i32) -> (i32, i32) {
    %c0_i32 = arith.constant 0 : i32
    %c0_i32_0 = arith.constant 0 : i32
    return %arg0, %c0_i32 : i32, i32
  }
}

</mosaic_0001>

<bundles_post_ra>
// kernel: classify_forward.1
= control target key start
LH: loop header
LB: loop body
LE: loop exit
PB: predicated region body
PF: predicated region fallthrough
CT: control target
= control target key end

     0   :  { %8 = vsyncpa [#allocation3], 0  ;;  %s1879_s0 = inlined_call_operand.hbm [shape: f32[8,64], index: 0, kind: input, shape index: {}]   ;;  %s1880_s1 = inlined_call_operand.hbm [shape: bf16[1216,512], index: 1, kind: input, shape index: {}]   ;;  %s1881_s2 = inlined_call_operand.hbm [shape: f32[1,1280], index: 2, kind: input, shape index: {}]   ;;  %s1882_s3 = inlined_call_operand.vmem [shape: bf16[8,128], index: 3, kind: output, shape index: {}]  }
   0x1   :  { %9 = vsyncpa [#allocation5], 0  ;;  %s25_s14 = sshll.u32 %s1880_s1, 4  ;;  %s1832_s15 = smov [#allocation4]   ;;  %s26_s14 = int_to_ptr.hbm [resolvable:$true] %s25_s14 }
   0x2   :  { %s27_s16 = sshll.u32 %s1832_s15, 4  ;;  %s15_s19 = sshll.u32 %s1879_s0, 4  ;;  %s28_s16 = int_to_ptr.vmem [resolvable:$true] %s27_s16  ;;  %s16_s19 = int_to_ptr.hbm [resolvable:$true] %s15_s19 }
   0x3   :  { %s1833_s20 = smov 256   ;;  %s1834_s21 = smov 16  }
   0x4   :  { %33 = dma.hbm_to_vmem [thread:$0]  %s26_s14, 38912, %s28_s16, [#allocation5], %s1833_s20, %s1833_s20, %s1834_s21  }
   0x5   :  { %s1835_s22 = smov [#allocation2]   ;;  %s39_s26 = sshll.u32 %s1881_s2, 4  ;;  %s40_s26 = int_to_ptr.hbm [resolvable:$true] %s39_s26 }
   0x6   :  { %s17_s23 = sshll.u32 %s1835_s22, 4  ;;  %s1836_s1 = smov [#allocation6]   ;;  %s18_s23 = int_to_ptr.vmem [resolvable:$true] %s17_s23 }
   0x7   :  { %20 = dma.hbm_to_vmem [thread:$0]  %s16_s19, 128, %s18_s23, [#allocation3]  }
   0x8   :  { %s41_s27 = sshll.u32 %s1836_s1, 4  ;;  %s42_s27 = int_to_ptr.vmem [resolvable:$true] %s41_s27 }
   0x9   :  { %44 = dma.hbm_to_vmem [thread:$0]  %s40_s26, 160, %s42_s27, [#allocation5]  }
   0xa   :  { %1828 = dma.done.wait [#allocation3], 128  }
   0xb   :  { %1829 = vsyncadd [#allocation3], 4294967168 }
   0xc   :  { %1830 = dma.done.wait [#allocation5], 39072  }
   0xd   :  { %1831 = vsyncadd [#allocation5], 4294928224  ;;  %v1193_v0 = vld [vmem:[#allocation4 + $0x60] sm:$0xf]  ;;  %v1641_v1 = vld [vmem:[#allocation4 + $0x6c] sm:$0xf0] }
   0xe   :  { %v1201_v2 = vld [vmem:[#allocation4 + $0x68] sm:$0xf]  ;;  %v1194_v3 = vor.u32 %v1641_v1, %v1193_v0  ;;  %v1642_v4 = vld [vmem:[#allocation4 + $0x74] sm:$0xf0]  ;;  %v1640_v5 = vld [vmem:[#allocation4 + $0x6c] sm:$0xf] }
   0xf   :  { %v1203_v6 = vld [vmem:[#allocation4 + $0x78] sm:$0xf0]  ;;  %v1202_v7 = vor.u32 %v1642_v4, %v1201_v2  ;;  %v1177_v9 = vld [vmem:[#allocation4 + $0x40] sm:$0xf]  ;;  %v1637_v10 = vld [vmem:[#allocation4 + $0x4c] sm:$0xf0] }
  0x10   :  { %v1206_v8 = vor.u32 %v1640_v5, %v1203_v6  ;;  %v1185_v11 = vld [vmem:[#allocation4 + $0x48] sm:$0xf]  ;;  %174 = vmatpush.bf16.msra.mxu1 %v1194_v3  ;;  %v1178_v12 = vor.u32 %v1637_v10, %v1177_v9  ;;  %v1638_v13 = vld [vmem:[#allocation4 + $0x54] sm:$0xf0]  ;;  %v1636_v14 = vld [vmem:[#allocation4 + $0x4c] sm:$0xf] }
  0x11   :  { %v1187_v15 = vld [vmem:[#allocation4 + $0x58] sm:$0xf0]  ;;  %200 = vmatpush.bf16.msra.mxu2 %v1202_v7  ;;  %v1186_v16 = vor.u32 %v1638_v13, %v1185_v11  ;;  %v1161_v18 = vld [vmem:[#allocation4 + $0x20] sm:$0xf]  ;;  %v1633_v19 = vld [vmem:[#allocation4 + $0x2c] sm:$0xf0] }
  0x12   :  { %213 = vmatpush.bf16.msra.mxu3 %v1206_v8  ;;  %v1190_v17 = vor.u32 %v1636_v14, %v1187_v15  ;;  %v1169_v20 = vld [vmem:[#allocation4 + $0x28] sm:$0xf]  ;;  %v1634_v21 = vld [vmem:[#allocation4 + $0x34] sm:$0xf0]  ;;  %v1632_v22 = vld [vmem:[#allocation4 + $0x2c] sm:$0xf]  ;;  %v1162_v24 = vor.u32 %v1633_v19, %v1161_v18 }
  0x13   :  { %v1171_v23 = vld [vmem:[#allocation4 + $0x38] sm:$0xf0]  ;;  %v1170_v25 = vor.u32 %v1634_v21, %v1169_v20  ;;  %v1145_v27 = vld [vmem:[#allocation4] sm:$0xf]  ;;  %v1629_v28 = vld [vmem:[#allocation4 + $0xc] sm:$0xf0] }
  0x14   :  { %175 = vmatpush.bf16.msra.mxu1 %v1178_v12  ;;  %v1174_v26 = vor.u32 %v1632_v22, %v1171_v23  ;;  %v1153_v29 = vld [vmem:[#allocation4 + $0x8] sm:$0xf]  ;;  %v1630_v30 = vld [vmem:[#allocation4 + $0x14] sm:$0xf0]  ;;  %v1628_v31 = vld [vmem:[#allocation4 + $0xc] sm:$0xf]  ;;  %v1146_v36 = vor.u32 %v1629_v28, %v1145_v27 }
  0x15   :  { %201 = vmatpush.bf16.msra.mxu2 %v1186_v16  ;;  %v1155_v32 = vld [vmem:[#allocation4 + $0x18] sm:$0xf0]  ;;  %v1639_v34 = vld [vmem:[#allocation4 + $0x64] sm:$0xf]  ;;  %v1195_v35 = vld [vmem:[#allocation4 + $0x70] sm:$0xf0]  ;;  %v1154_v40 = vor.u32 %v1630_v30, %v1153_v29 }
  0x16   :  { %214 = vmatpush.bf16.msra.mxu3 %v1190_v17  ;;  %v58_v33 = vld [vmem:[#allocation2] sm:$0xff]  ;;  %v1269_v37 = vld [vmem:[#allocation4 + $0x160] sm:$0xf]  ;;  %v1658_v38 = vld [vmem:[#allocation4 + $0x16c] sm:$0xf0]  ;;  %v1158_v41 = vor.u32 %v1628_v31, %v1155_v32  ;;  %v1198_v46 = vor.u32 %v1639_v34, %v1195_v35  ;;  %vm166_vm0 = vcmask 523264  }
  0x17   :  { %v1261_v39 = vld [vmem:[#allocation4 + $0x140] sm:$0xf]  ;;  %v1270_v42 = vor.u32 %v1658_v38, %v1269_v37  ;;  %v1656_v43 = vld [vmem:[#allocation4 + $0x14c] sm:$0xf0]  ;;  %v1635_v47 = vld [vmem:[#allocation4 + $0x44] sm:$0xf]  ;;  %v1866_v51 = vpack.c.bf16 %v58_v33, %v58_v33 }
  0x18   :  { %176 = vmatpush.bf16.msra.mxu1 %v1162_v24  ;;  %v1397_v44 = vld [vmem:[#allocation4 + $0x360] sm:$0xf]  ;;  %v1690_v45 = vld [vmem:[#allocation4 + $0x36c] sm:$0xf0]  ;;  %v1179_v52 = vld [vmem:[#allocation4 + $0x50] sm:$0xf0]  ;;  %v1262_v53 = vor.u32 %v1656_v43, %v1261_v39 }
  0x19   :  { %202 = vmatpush.bf16.msra.mxu2 %v1170_v25  ;;  %v1398_v48 = vor.u32 %v1690_v45, %v1397_v44  ;;  %v1461_v49 = vld [vmem:[#allocation4 + $0x460] sm:$0xf]  ;;  %v1706_v50 = vld [vmem:[#allocation4 + $0x46c] sm:$0xf0]  ;;  %620 = vmatpush.bf16.msra.mxu0 %v1270_v42  ;;  %v1182_v59 = vor.u32 %v1635_v47, %v1179_v52  ;;  %v1631_v60 = vld [vmem:[#allocation4 + $0x24] sm:$0xf] }
  0x1a   :  { %215 = vmatpush.bf16.msra.mxu3 %v1174_v26  ;;  %v1389_v54 = vld [vmem:[#allocation4 + $0x340] sm:$0xf]  ;;  %v1688_v55 = vld [vmem:[#allocation4 + $0x34c] sm:$0xf0]  ;;  %v1462_v58 = vor.u32 %v1706_v50, %v1461_v49  ;;  %v1163_v0 = vld [vmem:[#allocation4 + $0x30] sm:$0xf0] }
  0x1b   :  { %v1253_v56 = vld [vmem:[#allocation4 + $0x120] sm:$0xf]  ;;  %v1654_v57 = vld [vmem:[#allocation4 + $0x12c] sm:$0xf0]  ;;  %v1390_v61 = vor.u32 %v1688_v55, %v1389_v54  ;;  %v1627_v6 = vld [vmem:[#allocation4 + $0x4] sm:$0xf]  ;;  %v1166_v8 = vor.u32 %v1631_v60, %v1163_v0 }
  0x1c   :  { %177 = vmatpush.bf16.msra.mxu1 %v1146_v36  ;;  %v1453_v62 = vld [vmem:[#allocation4 + $0x440] sm:$0xf]  ;;  %v1704_v63 = vld [vmem:[#allocation4 + $0x44c] sm:$0xf0]  ;;  %v1254_v1 = vor.u32 %v1654_v57, %v1253_v56  ;;  %v1147_v9 = vld [vmem:[#allocation4 + $0x10] sm:$0xf0] }
  0x1d   :  { %203 = vmatpush.bf16.msra.mxu2 %v1154_v40  ;;  %621 = vmatpush.bf16.msra.mxu0 %v1262_v53  ;;  %v1381_v2 = vld [vmem:[#allocation4 + $0x320] sm:$0xf]  ;;  %v1686_v3 = vld [vmem:[#allocation4 + $0x32c] sm:$0xf0]  ;;  %v1454_v7 = vor.u32 %v1704_v63, %v1453_v62  ;;  %v1150_v21 = vor.u32 %v1627_v6, %v1147_v9  ;;  %v1271_v60 = vld [vmem:[#allocation4 + $0x170] sm:$0xf0] }
  0x1e   :  { %216 = vmatpush.bf16.msra.mxu3 %v1158_v41  ;;  %v1245_v4 = vld [vmem:[#allocation4 + $0x100] sm:$0xf]  ;;  %v1652_v5 = vld [vmem:[#allocation4 + $0x10c] sm:$0xf0]  ;;  %v1382_v10 = vor.u32 %v1686_v3, %v1381_v2  ;;  %v1399_v6 = vld [vmem:[#allocation4 + $0x370] sm:$0xf0] }
  0x1f   :  { %1207 = vmatmul.msk.bf16.vlgmr.msra.gmra.mxu1 %vm166_vm0, %v1866_v51  ;;  %v1445_v11 = vld [vmem:[#allocation4 + $0x420] sm:$0xf]  ;;  %v1702_v12 = vld [vmem:[#allocation4 + $0x42c] sm:$0xf0]  ;;  %v1246_v13 = vor.u32 %v1652_v5, %v1245_v4  ;;  %v1689_v5 = vld [vmem:[#allocation4 + $0x364] sm:$0xf] }
  0x20   :  { %187 = vmatpush.bf16.msrb.mxu1 %v1198_v46  ;;  %1209 = vmatmul.msk.bf16.vlgmr.msra.gmra.mxu2 %vm166_vm0, %v1866_v51  ;;  %v1237_v14 = vld [vmem:[#allocation4 + $0xe0] sm:$0xf]  ;;  %v1684_v16 = vld [vmem:[#allocation4 + $0x30c] sm:$0xf0]  ;;  %v1446_v20 = vor.u32 %v1702_v12, %v1445_v11  ;;  %v1655_v9 = vld [vmem:[#allocation4 + $0x144] sm:$0xf] }
  0x21   :  { %646 = vmatpush.bf16.msrb.mxu2 %v1398_v48  ;;  %1210 = vmatmul.msk.bf16.vlgmr.msra.gmra.mxu3 %vm166_vm0, %v1866_v51  ;;  %v1373_v15 = vld [vmem:[#allocation4 + $0x300] sm:$0xf]  ;;  %v1650_v17 = vld [vmem:[#allocation4 + $0xec] sm:$0xf0] }
  0x22   :  { %659 = vmatpush.bf16.msrb.mxu3 %v1462_v58  ;;  %622 = vmatpush.bf16.msra.mxu0 %v1254_v1  ;;  %v1333_v18 = vld [vmem:[#allocation4 + $0x260] sm:$0xf]  ;;  %v1674_v19 = vld [vmem:[#allocation4 + $0x26c] sm:$0xf0]  ;;  %v1374_v22 = vor.u32 %v1684_v16, %v1373_v15  ;;  %v1238_v25 = vor.u32 %v1650_v17, %v1237_v14  ;;  %v1402_v14 = vor.u32 %v1689_v5, %v1399_v6  ;;  %v1705_v15 = vld [vmem:[#allocation4 + $0x464] sm:$0xf] }
  0x23   :  { %v1437_v23 = vld [vmem:[#allocation4 + $0x400] sm:$0xf]  ;;  %v1700_v24 = vld [vmem:[#allocation4 + $0x40c] sm:$0xf0]  ;;  %v1334_v26 = vor.u32 %v1674_v19, %v1333_v18  ;;  %v1463_v16 = vld [vmem:[#allocation4 + $0x470] sm:$0xf0] }
  0x24   :  { %188 = vmatpush.bf16.msrb.mxu1 %v1182_v59  ;;  %v1365_v27 = vld [vmem:[#allocation4 + $0x2e0] sm:$0xf]  ;;  %v1682_v28 = vld [vmem:[#allocation4 + $0x2ec] sm:$0xf0]  ;;  %v1438_v31 = vor.u32 %v1700_v24, %v1437_v23  ;;  %v1657_v59 = vld [vmem:[#allocation4 + $0x164] sm:$0xf] }
  0x25   :  { %647 = vmatpush.bf16.msrb.mxu2 %v1390_v61  ;;  %v1229_v29 = vld [vmem:[#allocation4 + $0xc0] sm:$0xf]  ;;  %v1648_v30 = vld [vmem:[#allocation4 + $0xcc] sm:$0xf0]  ;;  %v1366_v34 = vor.u32 %v1682_v28, %v1365_v27  ;;  %v1274_v3 = vor.u32 %v1657_v59, %v1271_v60  ;;  %v1653_v24 = vld [vmem:[#allocation4 + $0x124] sm:$0xf] }
  0x26   :  { %660 = vmatpush.bf16.msrb.mxu3 %v1454_v7  ;;  %623 = vmatpush.bf16.msra.mxu0 %v1246_v13  ;;  %v1325_v32 = vld [vmem:[#allocation4 + $0x240] sm:$0xf]  ;;  %v1672_v33 = vld [vmem:[#allocation4 + $0x24c] sm:$0xf0]  ;;  %v1230_v37 = vor.u32 %v1648_v30, %v1229_v29  ;;  %v1687_v27 = vld [vmem:[#allocation4 + $0x344] sm:$0xf] }
  0x27   :  { %v1429_v35 = vld [vmem:[#allocation4 + $0x3e0] sm:$0xf]  ;;  %v1698_v36 = vld [vmem:[#allocation4 + $0x3ec] sm:$0xf0]  ;;  %v1326_v40 = vor.u32 %v1672_v33, %v1325_v32  ;;  %v1391_v28 = vld [vmem:[#allocation4 + $0x350] sm:$0xf0] }
  0x28   :  { %189 = vmatpush.bf16.msrb.mxu1 %v1166_v8  ;;  %v1357_v38 = vld [vmem:[#allocation4 + $0x2c0] sm:$0xf]  ;;  %v1680_v39 = vld [vmem:[#allocation4 + $0x2cc] sm:$0xf0]  ;;  %v1430_v44 = vor.u32 %v1698_v36, %v1429_v35  ;;  %v1703_v29 = vld [vmem:[#allocation4 + $0x444] sm:$0xf]  ;;  %v1394_v30 = vor.u32 %v1687_v27, %v1391_v28 }
  0x29   :  { %648 = vmatpush.bf16.msrb.mxu2 %v1382_v10  ;;  %v1221_v41 = vld [vmem:[#allocation4 + $0xa0] sm:$0xf]  ;;  %v1646_v42 = vld [vmem:[#allocation4 + $0xac] sm:$0xf0]  ;;  %v1358_v48 = vor.u32 %v1680_v39, %v1357_v38  ;;  %v1263_v10 = vld [vmem:[#allocation4 + $0x150] sm:$0xf0] }
  0x2a   :  { %661 = vmatpush.bf16.msrb.mxu3 %v1446_v20  ;;  %624 = vmatpush.bf16.msra.mxu0 %v1238_v25  ;;  %v1317_v43 = vld [vmem:[#allocation4 + $0x220] sm:$0xf]  ;;  %v1670_v45 = vld [vmem:[#allocation4 + $0x22c] sm:$0xf0]  ;;  %v1222_v53 = vor.u32 %v1646_v42, %v1221_v41  ;;  %v1266_v18 = vor.u32 %v1655_v9, %v1263_v10  ;;  %v1255_v25 = vld [vmem:[#allocation4 + $0x130] sm:$0xf0] }
  0x2b   :  { %v1421_v46 = vld [vmem:[#allocation4 + $0x3c0] sm:$0xf]  ;;  %v1696_v47 = vld [vmem:[#allocation4 + $0x3cc] sm:$0xf0]  ;;  %v1318_v55 = vor.u32 %v1670_v45, %v1317_v43  ;;  %v1651_v36 = vld [vmem:[#allocation4 + $0x104] sm:$0xf] }
  0x2c   :  { %190 = vmatpush.bf16.msrb.mxu1 %v1150_v21  ;;  %v1213_v49 = vld [vmem:[#allocation4 + $0x80] sm:$0xf]  ;;  %v1644_v50 = vld [vmem:[#allocation4 + $0x8c] sm:$0xf0]  ;;  %v1422_v57 = vor.u32 %v1696_v47, %v1421_v46  ;;  %v1685_v39 = vld [vmem:[#allocation4 + $0x324] sm:$0xf] }
  0x2d   :  { %649 = vmatpush.bf16.msrb.mxu2 %v1374_v22  ;;  %v1349_v52 = vld [vmem:[#allocation4 + $0x2a0] sm:$0xf]  ;;  %v1678_v54 = vld [vmem:[#allocation4 + $0x2ac] sm:$0xf0]  ;;  %v1214_v0 = vor.u32 %v1644_v50, %v1213_v49  ;;  %v1466_v22 = vor.u32 %v1705_v15, %v1463_v16  ;;  %v1701_v41 = vld [vmem:[#allocation4 + $0x424] sm:$0xf] }
  0x2e   :  { %662 = vmatpush.bf16.msrb.mxu3 %v1438_v31  ;;  %625 = vmatpush.bf16.msra.mxu0 %v1230_v37  ;;  %v1309_v56 = vld [vmem:[#allocation4 + $0x200] sm:$0xf]  ;;  %v1668_v58 = vld [vmem:[#allocation4 + $0x20c] sm:$0xf0]  ;;  %v1350_v61 = vor.u32 %v1678_v54, %v1349_v52  ;;  %v1455_v31 = vld [vmem:[#allocation4 + $0x450] sm:$0xf0] }
  0x2f   :  { %1208 = vmatmul.msk.bf16.vlgmr.msrb.gmra.mxu1 %vm166_vm0, %v1866_v51  ;;  %v1413_v62 = vld [vmem:[#allocation4 + $0x3a0] sm:$0xf]  ;;  %v1694_v63 = vld [vmem:[#allocation4 + $0x3ac] sm:$0xf0]  ;;  %v1310_v51 = vor.u32 %v1668_v58, %v1309_v56  ;;  %v1247_v37 = vld [vmem:[#allocation4 + $0x110] sm:$0xf0] }
  0x30   :  { %633 = vmatpush.bf16.msra.mxu1 %v1334_v26  ;;  %v1341_v1 = vld [vmem:[#allocation4 + $0x280] sm:$0xf]  ;;  %v1676_v2 = vld [vmem:[#allocation4 + $0x28c] sm:$0xf0]  ;;  %v1414_v7 = vor.u32 %v1694_v63, %v1413_v62  ;;  %v1258_v26 = vor.u32 %v1653_v24, %v1255_v25  ;;  %v1250_v38 = vor.u32 %v1651_v36, %v1247_v37  ;;  %v1447_v43 = vld [vmem:[#allocation4 + $0x430] sm:$0xf0] }
  0x31   :  { %650 = vmatpush.bf16.msrb.mxu2 %v1366_v34  ;;  %v1301_v4 = vld [vmem:[#allocation4 + $0x1e0] sm:$0xf]  ;;  %v1666_v8 = vld [vmem:[#allocation4 + $0x1ec] sm:$0xf0]  ;;  %v1342_v11 = vor.u32 %v1676_v2, %v1341_v1  ;;  %v1458_v34 = vor.u32 %v1703_v29, %v1455_v31  ;;  %v1450_v46 = vor.u32 %v1701_v41, %v1447_v43  ;;  %v1239_v49 = vld [vmem:[#allocation4 + $0xf0] sm:$0xf0] }
  0x32   :  { %663 = vmatpush.bf16.msrb.mxu3 %v1430_v44  ;;  %626 = vmatpush.bf16.msra.mxu0 %v1222_v53  ;;  %v1405_v12 = vld [vmem:[#allocation4 + $0x380] sm:$0xf]  ;;  %v1692_v13 = vld [vmem:[#allocation4 + $0x38c] sm:$0xf0]  ;;  %v1302_v17 = vor.u32 %v1666_v8, %v1301_v4  ;;  %v1673_v52 = vld [vmem:[#allocation4 + $0x264] sm:$0xf] }
  0x33   :  { %v1406_v19 = vor.u32 %v1692_v13, %v1405_v12  ;;  %v1293_v20 = vld [vmem:[#allocation4 + $0x1c0] sm:$0xf]  ;;  %v1664_v21 = vld [vmem:[#allocation4 + $0x1cc] sm:$0xf0]  ;;  %v1335_v53 = vld [vmem:[#allocation4 + $0x270] sm:$0xf0] }
  0x34   :  { %634 = vmatpush.bf16.msra.mxu1 %v1326_v40  ;;  %v1294_v23 = vor.u32 %v1664_v21, %v1293_v20  ;;  %v1285_v32 = vld [vmem:[#allocation4 + $0x1a0] sm:$0xf]  ;;  %v1662_v33 = vld [vmem:[#allocation4 + $0x1ac] sm:$0xf0]  ;;  %v1383_v40 = vld [vmem:[#allocation4 + $0x330] sm:$0xf0]  ;;  %v1338_v54 = vor.u32 %v1673_v52, %v1335_v53 }
  0x35   :  { %651 = vmatpush.bf16.msrb.mxu2 %v1358_v48  ;;  %v1286_v35 = vor.u32 %v1662_v33, %v1285_v32  ;;  %v1386_v42 = vor.u32 %v1685_v39, %v1383_v40  ;;  %v1277_v44 = vld [vmem:[#allocation4 + $0x180] sm:$0xf]  ;;  %v1660_v45 = vld [vmem:[#allocation4 + $0x18c] sm:$0xf0]  ;;  %v1649_v48 = vld [vmem:[#allocation4 + $0xe4] sm:$0xf] }
  0x36   :  { %664 = vmatpush.bf16.msrb.mxu3 %v1422_v57  ;;  %627 = vmatpush.bf16.msra.mxu0 %v1214_v0  ;;  %v1278_v47 = vor.u32 %v1660_v45, %v1277_v44  ;;  %v1242_v50 = vor.u32 %v1649_v48, %v1239_v49  ;;  %v1375_v56 = vld [vmem:[#allocation4 + $0x310] sm:$0xf0]  ;;  %v1699_v57 = vld [vmem:[#allocation4 + $0x404] sm:$0xf] }
  0x37   :  { %v1439_v59 = vld [vmem:[#allocation4 + $0x410] sm:$0xf0]  ;;  %v1671_v63 = vld [vmem:[#allocation4 + $0x244] sm:$0xf] }
  0x38   :  { %635 = vmatpush.bf16.msra.mxu1 %v1318_v55  ;;  %v1683_v55 = vld [vmem:[#allocation4 + $0x304] sm:$0xf]  ;;  %v1442_v60 = vor.u32 %v1699_v57, %v1439_v59  ;;  %v1231_v62 = vld [vmem:[#allocation4 + $0xd0] sm:$0xf0] }
  0x39   :  { %652 = vmatpush.bf16.msrb.mxu2 %v1350_v61  ;;  %v1378_v58 = vor.u32 %v1683_v55, %v1375_v56  ;;  %v1647_v61 = vld [vmem:[#allocation4 + $0xc4] sm:$0xf]  ;;  %v1327_v1 = vld [vmem:[#allocation4 + $0x250] sm:$0xf0] }
  0x3a   :  { %672 = vmatpush.bf16.msrb.mxu0 %v1274_v3  ;;  %665 = vmatpush.bf16.msrb.mxu3 %v1414_v7  ;;  %v1234_v0 = vor.u32 %v1647_v61, %v1231_v62  ;;  %v1330_v2 = vor.u32 %v1671_v63, %v1327_v1  ;;  %v1367_v3 = vld [vmem:[#allocation4 + $0x2f0] sm:$0xf0]  ;;  %v1697_v4 = vld [vmem:[#allocation4 + $0x3e4] sm:$0xf]  ;;  %v1497_v61 = vld [vmem:[#allocation4 + $0x560] sm:$0xf] }
  0x3b   :  { %v1431_v6 = vld [vmem:[#allocation4 + $0x3f0] sm:$0xf0]  ;;  %v1645_v8 = vld [vmem:[#allocation4 + $0xa4] sm:$0xf]  ;;  %v1714_v62 = vld [vmem:[#allocation4 + $0x56c] sm:$0xf0] }
  0x3c   :  { %636 = vmatpush.bf16.msra.mxu1 %v1310_v51  ;;  %v1681_v51 = vld [vmem:[#allocation4 + $0x2e4] sm:$0xf]  ;;  %v1434_v7 = vor.u32 %v1697_v4, %v1431_v6  ;;  %v1223_v9 = vld [vmem:[#allocation4 + $0xb0] sm:$0xf0] }
  0x3d   :  { %653 = vmatpush.bf16.msrb.mxu2 %v1342_v11  ;;  %v1370_v5 = vor.u32 %v1681_v51, %v1367_v3  ;;  %v1669_v10 = vld [vmem:[#allocation4 + $0x224] sm:$0xf]  ;;  %v1226_v11 = vor.u32 %v1645_v8, %v1223_v9  ;;  %v1319_v12 = vld [vmem:[#allocation4 + $0x230] sm:$0xf0] }
  0x3e   :  { %673 = vmatpush.bf16.msrb.mxu0 %v1266_v18  ;;  %666 = vmatpush.bf16.msrb.mxu3 %v1406_v19  ;;  %v1322_v13 = vor.u32 %v1669_v10, %v1319_v12  ;;  %v1359_v15 = vld [vmem:[#allocation4 + $0x2d0] sm:$0xf0]  ;;  %v1695_v16 = vld [vmem:[#allocation4 + $0x3c4] sm:$0xf] }
  0x3f   :  { %v1423_v18 = vld [vmem:[#allocation4 + $0x3d0] sm:$0xf0]  ;;  %v1643_v20 = vld [vmem:[#allocation4 + $0x84] sm:$0xf] }
  0x40   :  { %637 = vmatpush.bf16.msra.mxu1 %v1302_v17  ;;  %v1426_v19 = vor.u32 %v1695_v16, %v1423_v18  ;;  %v1215_v21 = vld [vmem:[#allocation4 + $0x90] sm:$0xf0]  ;;  %v1693_v28 = vld [vmem:[#allocation4 + $0x3a4] sm:$0xf]  ;;  %v1712_v18 = vld [vmem:[#allocation4 + $0x52c] sm:$0xf0] }
  0x41   :  { %698 = vmatpush.bf16.msra.mxu2 %v1402_v14  ;;  %v1679_v14 = vld [vmem:[#allocation4 + $0x2c4] sm:$0xf]  ;;  %v1311_v24 = vld [vmem:[#allocation4 + $0x210] sm:$0xf0] }
  0x42   :  { %711 = vmatpush.bf16.msra.mxu3 %v1466_v22  ;;  %674 = vmatpush.bf16.msrb.mxu0 %v1258_v26  ;;  %v1362_v17 = vor.u32 %v1679_v14, %v1359_v15  ;;  %v1667_v22 = vld [vmem:[#allocation4 + $0x204] sm:$0xf]  ;;  %v1351_v27 = vld [vmem:[#allocation4 + $0x2b0] sm:$0xf0]  ;;  %v1493_v14 = vld [vmem:[#allocation4 + $0x540] sm:$0xf] }
  0x43   :  { %v1314_v25 = vor.u32 %v1667_v22, %v1311_v24  ;;  %v1677_v26 = vld [vmem:[#allocation4 + $0x2a4] sm:$0xf]  ;;  %v1303_v33 = vld [vmem:[#allocation4 + $0x1f0] sm:$0xf0]  ;;  %v1713_v15 = vld [vmem:[#allocation4 + $0x54c] sm:$0xf0] }
  0x44   :  { %638 = vmatpush.bf16.msra.mxu1 %v1294_v23  ;;  %v1218_v23 = vor.u32 %v1643_v20, %v1215_v21  ;;  %v1354_v29 = vor.u32 %v1677_v26, %v1351_v27  ;;  %v1665_v32 = vld [vmem:[#allocation4 + $0x1e4] sm:$0xf]  ;;  %v1343_v36 = vld [vmem:[#allocation4 + $0x290] sm:$0xf0]  ;;  %v1494_v16 = vor.u32 %v1713_v15, %v1493_v14  ;;  %v1485_v20 = vld [vmem:[#allocation4 + $0x500] sm:$0xf] }
  0x45   :  { %699 = vmatpush.bf16.msra.mxu2 %v1394_v30  ;;  %v1415_v30 = vld [vmem:[#allocation4 + $0x3b0] sm:$0xf0]  ;;  %v1691_v37 = vld [vmem:[#allocation4 + $0x384] sm:$0xf]  ;;  %v1711_v21 = vld [vmem:[#allocation4 + $0x50c] sm:$0xf0] }
  0x46   :  { %712 = vmatpush.bf16.msra.mxu3 %v1458_v34  ;;  %675 = vmatpush.bf16.msrb.mxu0 %v1250_v38  ;;  %v1418_v31 = vor.u32 %v1693_v28, %v1415_v30  ;;  %v1306_v34 = vor.u32 %v1665_v32, %v1303_v33  ;;  %v1407_v39 = vld [vmem:[#allocation4 + $0x390] sm:$0xf0]  ;;  %v1663_v40 = vld [vmem:[#allocation4 + $0x1c4] sm:$0xf]  ;;  %v1486_v22 = vor.u32 %v1711_v21, %v1485_v20  ;;  %v1710_v24 = vld [vmem:[#allocation4 + $0x4ec] sm:$0xf0] }
  0x47   :  { %v1295_v41 = vld [vmem:[#allocation4 + $0x1d0] sm:$0xf0]  ;;  %v1410_v43 = vor.u32 %v1691_v37, %v1407_v39  ;;  %v1659_v49 = vld [vmem:[#allocation4 + $0x184] sm:$0xf]  ;;  %v1722_v27 = vld [vmem:[#allocation4 + $0x66c] sm:$0xf0] }
  0x48   :  { %639 = vmatpush.bf16.msra.mxu1 %v1286_v35  ;;  %v1675_v35 = vld [vmem:[#allocation4 + $0x284] sm:$0xf]  ;;  %v1298_v44 = vor.u32 %v1663_v40, %v1295_v41  ;;  %v1709_v30 = vld [vmem:[#allocation4 + $0x4cc] sm:$0xf0]  ;;  %v1521_v37 = vld [vmem:[#allocation4 + $0x620] sm:$0xf] }
  0x49   :  { %700 = vmatpush.bf16.msra.mxu2 %v1386_v42  ;;  %v1346_v38 = vor.u32 %v1675_v35, %v1343_v36  ;;  %v76_v42 = vld [vmem:[#allocation6] sm:$0xf]  ;;  %v1721_v33 = vld [vmem:[#allocation4 + $0x64c] sm:$0xf0] }
  0x4a   :  { %713 = vmatpush.bf16.msra.mxu3 %v1450_v46  ;;  %676 = vmatpush.bf16.msrb.mxu0 %v1242_v50  ;;  %v78_v45 = vperm.slane %v76_v42, 0  ;;  %v1661_v46 = vld [vmem:[#allocation4 + $0x1a4] sm:$0xf]  ;;  %v1279_v50 = vld [vmem:[#allocation4 + $0x190] sm:$0xf0]  ;;  %v80_v56 = vperm.slane %v76_v42, 2 }
  0x4b   :  { %v81_v57 = vperm.slane %v76_v42, 3  ;;  %v79_v6 = vperm.slane %v76_v42, 1  ;;  %v1473_v35 = vld [vmem:[#allocation4 + $0x4a0] sm:$0xf]  ;;  %v1708_v36 = vld [vmem:[#allocation4 + $0x4ac] sm:$0xf0] }
  0x4c   :  { %640 = vmatpush.bf16.msra.mxu1 %v1278_v47  ;;  %v1287_v47 = vld [vmem:[#allocation4 + $0x1b0] sm:$0xf0]  ;;  %v1720_v39 = vld [vmem:[#allocation4 + $0x62c] sm:$0xf0]  ;;  %v1469_v41 = vld [vmem:[#allocation4 + $0x480] sm:$0xf] }
  0x4d   :  { %701 = vmatpush.bf16.msra.mxu2 %v1378_v58  ;;  %v1290_v48 = vor.u32 %v1661_v46, %v1287_v47  ;;  %v1522_v40 = vor.u32 %v1720_v39, %v1521_v37  ;;  %v1707_v42 = vld [vmem:[#allocation4 + $0x48c] sm:$0xf0]  ;;  %v1513_v47 = vld [vmem:[#allocation4 + $0x5e0] sm:$0xf] }
  0x4e   :  { %714 = vmatpush.bf16.msra.mxu3 %v1442_v60  ;;  %677 = vmatpush.bf16.msrb.mxu0 %v1234_v0  ;;  %v1726_v39 = vld [vmem:[#allocation4 + $0x6ec] sm:$0xf0] }
  0x50   :  { %685 = vmatpush.bf16.msrb.mxu1 %v1338_v54  ;;  %v1282_v54 = vor.u32 %v1659_v49, %v1279_v50  ;;  %v1509_v50 = vld [vmem:[#allocation4 + $0x5c0] sm:$0xf] }
  0x51   :  { %702 = vmatpush.bf16.msra.mxu2 %v1370_v5 }
  0x52   :  { %715 = vmatpush.bf16.msra.mxu3 %v1434_v7  ;;  %678 = vmatpush.bf16.msrb.mxu0 %v1226_v11 }
  0x54   :  { %686 = vmatpush.bf16.msrb.mxu1 %v1330_v2  ;;  %v1498_v2 = vor.u32 %v1714_v62, %v1497_v61 }
  0x55   :  { %703 = vmatpush.bf16.msra.mxu2 %v1362_v17  ;;  %v1489_v17 = vld [vmem:[#allocation4 + $0x520] sm:$0xf] }
  0x56   :  { %716 = vmatpush.bf16.msra.mxu3 %v1426_v19  ;;  %679 = vmatpush.bf16.msrb.mxu0 %v1218_v23  ;;  %v1490_v19 = vor.u32 %v1712_v18, %v1489_v17  ;;  %v1481_v23 = vld [vmem:[#allocation4 + $0x4e0] sm:$0xf] }
  0x57   :  { %v1482_v26 = vor.u32 %v1710_v24, %v1481_v23 }
  0x58   :  { %687 = vmatpush.bf16.msrb.mxu1 %v1322_v13 }
  0x59   :  { %704 = vmatpush.bf16.msra.mxu2 %v1354_v29  ;;  %v1477_v29 = vld [vmem:[#allocation4 + $0x4c0] sm:$0xf] }
  0x5a   :  { %717 = vmatpush.bf16.msra.mxu3 %v1418_v31  ;;  %v1525_v31 = vld [vmem:[#allocation4 + $0x640] sm:$0xf]  ;;  %v1478_v32 = vor.u32 %v1709_v30, %v1477_v29 }
  0x5c   :  { %688 = vmatpush.bf16.msrb.mxu1 %v1314_v25  ;;  %v1529_v25 = vld [vmem:[#allocation4 + $0x660] sm:$0xf] }
  0x5d   :  { %705 = vmatpush.bf16.msra.mxu2 %v1346_v38  ;;  %v1530_v28 = vor.u32 %v1722_v27, %v1529_v25  ;;  %v1474_v38 = vor.u32 %v1708_v36, %v1473_v35  ;;  %v1549_v35 = vld [vmem:[#allocation4 + $0x700] sm:$0xf]  ;;  %v1727_v36 = vld [vmem:[#allocation4 + $0x70c] sm:$0xf0] }
  0x5e   :  { %718 = vmatpush.bf16.msra.mxu3 %v1410_v43  ;;  %v1517_v43 = vld [vmem:[#allocation4 + $0x600] sm:$0xf]  ;;  %v1550_v37 = vor.u32 %v1727_v36, %v1549_v35  ;;  %v1741_v35 = vld [vmem:[#allocation4 + $0x8cc] sm:$0xf0] }
  0x60   :  { %689 = vmatpush.bf16.msrb.mxu1 %v1306_v34  ;;  %v1526_v34 = vor.u32 %v1721_v33, %v1525_v31  ;;  %v1728_v33 = vld [vmem:[#allocation4 + $0x72c] sm:$0xf0] }
  0x64   :  { %690 = vmatpush.bf16.msrb.mxu1 %v1298_v44  ;;  %v1470_v44 = vor.u32 %v1707_v42, %v1469_v41  ;;  %v1541_v41 = vld [vmem:[#allocation4 + $0x6c0] sm:$0xf]  ;;  %v1725_v42 = vld [vmem:[#allocation4 + $0x6cc] sm:$0xf0] }
  0x68   :  { %691 = vmatpush.bf16.msrb.mxu1 %v1290_v48  ;;  %v1718_v48 = vld [vmem:[#allocation4 + $0x5ec] sm:$0xf0] }
  0x69   :  { %v1514_v49 = vor.u32 %v1718_v48, %v1513_v47  ;;  %v1533_v47 = vld [vmem:[#allocation4 + $0x680] sm:$0xf]  ;;  %v1723_v48 = vld [vmem:[#allocation4 + $0x68c] sm:$0xf0] }
  0x6c   :  { %692 = vmatpush.bf16.msrb.mxu1 %v1282_v54 }
  0x9c   :  { %v179_v52 = vpop.f32.mrf.mxu1 }
  0x9d   :  { %v180_v53 = vadd.f32 %v179_v52, %v78_v45  ;;  %v1719_v45 = vld [vmem:[#allocation4 + $0x60c] sm:$0xf0] }
  0x9e   :  { %v1518_v46 = vor.u32 %v1719_v45, %v1517_v43  ;;  %v1717_v52 = vld [vmem:[#allocation4 + $0x5cc] sm:$0xf0]  ;;  %v1542_v43 = vor.u32 %v1725_v42, %v1541_v41 }
  0x9f   :  { %v222_v55 = vmax.f32 %v180_v53, 0.0  ;;  %v1510_v53 = vor.u32 %v1717_v52, %v1509_v50  ;;  %v1724_v45 = vld [vmem:[#allocation4 + $0x6ac] sm:$0xf0]  ;;  %v1593_v50 = vld [vmem:[#allocation4 + $0x860] sm:$0xf] }
  0xa0   :  { %v1738_v52 = vld [vmem:[#allocation4 + $0x86c] sm:$0xf0] }
  0xa1   :  { %v226_v58 = vpack.c.bf16 %v222_v55, %v222_v55  ;;  %v1505_v55 = vld [vmem:[#allocation4 + $0x5a0] sm:$0xf] }
  0xa3   :  { %v205_v59 = vpop.f32.mrf.mxu2  ;;  %628 = vmatmul.bf16.vlgmr.msra.gmra.mxu0 %v226_v58 }
  0xa4   :  { %v218_v60 = vpop.f32.mrf.mxu3  ;;  %v206_v63 = vadd.f32 %v205_v59, %v80_v56  ;;  %v181_v1 = vpop.f32.mrf.mxu1  ;;  %860 = vmatpush.bf16.msra.mxu0 %v1498_v2  ;;  %v1716_v56 = vld [vmem:[#allocation4 + $0x5ac] sm:$0xf0]  ;;  %v1557_v2 = vld [vmem:[#allocation4 + $0x740] sm:$0xf] }
  0xa5   :  { %v219_v0 = vadd.f32 %v218_v60, %v81_v57  ;;  %v1506_v57 = vor.u32 %v1716_v56, %v1505_v55  ;;  %v1715_v59 = vld [vmem:[#allocation4 + $0x58c] sm:$0xf0]  ;;  %v294_v60 = vld [vmem:[#allocation6 + $0x4] sm:$0x3] }
  0xa6   :  { %v224_v51 = vmax.f32 %v206_v63, 0.0  ;;  %v296_v63 = vperm.slane %v294_v60, 0  ;;  %v1730_v1 = vld [vmem:[#allocation4 + $0x76c] sm:$0xf0] }
  0xa7   :  { %v225_v3 = vmax.f32 %v219_v0, 0.0  ;;  %v1561_v0 = vld [vmem:[#allocation4 + $0x760] sm:$0xf]  ;;  %v1737_v55 = vld [vmem:[#allocation4 + $0x84c] sm:$0xf0] }
  0xa8   :  { %v228_v4 = vpack.c.bf16 %v224_v51, %v224_v51  ;;  %861 = vmatpush.bf16.msra.mxu0 %v1494_v16  ;;  %v1562_v51 = vor.u32 %v1730_v1, %v1561_v0  ;;  %v1577_v0 = vld [vmem:[#allocation4 + $0x7e0] sm:$0xf]  ;;  %v1734_v1 = vld [vmem:[#allocation4 + $0x7ec] sm:$0xf0] }
  0xa9   :  { %v229_v5 = vpack.c.bf16 %v225_v3, %v225_v3  ;;  %v1729_v3 = vld [vmem:[#allocation4 + $0x74c] sm:$0xf0] }
  0xaa   :  { %654 = vmatmul.bf16.vlgmr.msrb.gmra.mxu2 %v228_v4 }
  0xab   :  { %667 = vmatmul.bf16.vlgmr.msrb.gmra.mxu3 %v229_v5  ;;  %v207_v7 = vpop.f32.mrf.mxu2  ;;  %956 = vmatpush.bf16.msrb.mxu2 %v1562_v51 }
  0xac   :  { %v220_v8 = vpop.f32.mrf.mxu3  ;;  %v192_v9 = vpop.f32.mrf.mxu1  ;;  %862 = vmatpush.bf16.msra.mxu0 %v1490_v19  ;;  %v297_v19 = vperm.slane %v294_v60, 1 }
  0xad   :  { %v193_v10 = vadd.f32 %v192_v9, %v79_v6  ;;  %v1558_v6 = vor.u32 %v1729_v3, %v1557_v2  ;;  %v1578_v2 = vor.u32 %v1734_v1, %v1577_v0  ;;  %v1573_v3 = vld [vmem:[#allocation4 + $0x7c0] sm:$0xf] }
  0xaf   :  { %v223_v11 = vmax.f32 %v193_v10, 0.0  ;;  %957 = vmatpush.bf16.msrb.mxu2 %v1558_v6 }
  0xb0   :  { %863 = vmatpush.bf16.msra.mxu0 %v1486_v22 }
  0xb1   :  { %v227_v12 = vpack.c.bf16 %v223_v11, %v223_v11 }
  0xb3   :  { %641 = vmatmul.bf16.vlgmr.msra.gmra.mxu1 %v227_v12  ;;  %680 = vmatmul.bf16.vlgmr.msrb.gmra.mxu0 %v226_v58  ;;  %v1501_v58 = vld [vmem:[#allocation4 + $0x580] sm:$0xf] }
  0xb4   :  { %v194_v13 = vpop.f32.mrf.mxu1  ;;  %864 = vmatpush.bf16.msra.mxu0 %v1482_v26  ;;  %873 = vmatpush.bf16.msra.mxu1 %v1530_v28  ;;  %v1502_v61 = vor.u32 %v1715_v59, %v1501_v58  ;;  %v1736_v58 = vld [vmem:[#allocation4 + $0x82c] sm:$0xf0] }
  0xb8   :  { %865 = vmatpush.bf16.msra.mxu0 %v1478_v32  ;;  %874 = vmatpush.bf16.msra.mxu1 %v1526_v34  ;;  %v1553_v32 = vld [vmem:[#allocation4 + $0x720] sm:$0xf] }
  0xb9   :  { %v1554_v34 = vor.u32 %v1728_v33, %v1553_v32  ;;  %v1742_v32 = vld [vmem:[#allocation4 + $0x8ec] sm:$0xf0] }
  0xba   :  { %706 = vmatmul.bf16.vlgmr.msra.gmra.mxu2 %v228_v4 }
  0xbb   :  { %719 = vmatmul.bf16.vlgmr.msra.gmra.mxu3 %v229_v5  ;;  %958 = vmatpush.bf16.msrb.mxu2 %v1554_v34  ;;  %v1605_v34 = vld [vmem:[#allocation4 + $0x8c0] sm:$0xf] }
  0xbc   :  { %866 = vmatpush.bf16.msra.mxu0 %v1474_v38  ;;  %875 = vmatpush.bf16.msra.mxu1 %v1522_v40  ;;  %v1545_v38 = vld [vmem:[#allocation4 + $0x6e0] sm:$0xf]  ;;  %v1606_v36 = vor.u32 %v1741_v35, %v1605_v34 }
  0xbd   :  { %v1546_v40 = vor.u32 %v1726_v39, %v1545_v38 }
  0xbf   :  { %959 = vmatpush.bf16.msrb.mxu2 %v1550_v37  ;;  %v1753_v37 = vld [vmem:[#allocation6 + $0x7] ss:$0 sm:$0xff] }
  0xc0   :  { %867 = vmatpush.bf16.msra.mxu0 %v1470_v44  ;;  %876 = vmatpush.bf16.msra.mxu1 %v1518_v46  ;;  %v1537_v44 = vld [vmem:[#allocation4 + $0x6a0] sm:$0xf] }
  0xc1   :  { %v1538_v46 = vor.u32 %v1724_v45, %v1537_v44  ;;  %v1740_v44 = vld [vmem:[#allocation4 + $0x8ac] sm:$0xf0] }
  0xc3   :  { %693 = vmatmul.bf16.vlgmr.msrb.gmra.mxu1 %v227_v12  ;;  %960 = vmatpush.bf16.msrb.mxu2 %v1546_v40 }
  0xc4   :  { %877 = vmatpush.bf16.msra.mxu1 %v1514_v49  ;;  %v1534_v49 = vor.u32 %v1723_v48, %v1533_v47  ;;  %v1739_v47 = vld [vmem:[#allocation4 + $0x88c] sm:$0xf0] }
  0xc7   :  { %961 = vmatpush.bf16.msrb.mxu2 %v1542_v43  ;;  %v1601_v43 = vld [vmem:[#allocation4 + $0x8a0] sm:$0xf] }
  0xc8   :  { %878 = vmatpush.bf16.msra.mxu1 %v1510_v53  ;;  %v1589_v53 = vld [vmem:[#allocation4 + $0x840] sm:$0xf]  ;;  %v1602_v45 = vor.u32 %v1740_v44, %v1601_v43 }
  0xc9   :  { %v1590_v56 = vor.u32 %v1737_v55, %v1589_v53 }
  0xcb   :  { %962 = vmatpush.bf16.msrb.mxu2 %v1538_v46  ;;  %v1597_v46 = vld [vmem:[#allocation4 + $0x880] sm:$0xf] }
  0xcc   :  { %879 = vmatpush.bf16.msra.mxu1 %v1506_v57  ;;  %v1585_v57 = vld [vmem:[#allocation4 + $0x820] sm:$0xf]  ;;  %v1598_v48 = vor.u32 %v1739_v47, %v1597_v46 }
  0xcd   :  { %v1586_v59 = vor.u32 %v1736_v58, %v1585_v57 }
  0xcf   :  { %963 = vmatpush.bf16.msrb.mxu2 %v1534_v49  ;;  %v1754_v49 = vld [vmem:[#allocation6 + $0x8] ss:$0 sm:$0xff] }
  0xd0   :  { %880 = vmatpush.bf16.msra.mxu1 %v1502_v61  ;;  %v1581_v61 = vld [vmem:[#allocation4 + $0x800] sm:$0xf] }
 0x120   :  { %v629_v54 = vpop.f32.mrf.mxu0 }
 0x121   :  { %v630_v7 = vadd.f32 %v629_v54, %v296_v63  ;;  %v1594_v54 = vor.u32 %v1738_v52, %v1593_v50 }
 0x123   :  { %1039 = vmatpush.bf16.msrb.mxu3 %v1594_v54 }
 0x127   :  { %1040 = vmatpush.bf16.msrb.mxu3 %v1590_v56  ;;  %v1755_v56 = vld [vmem:[#allocation6 + $0x9] ss:$0 sm:$0xff] }
 0x128   :  { %v631_v62 = vpop.f32.mrf.mxu0 }
 0x129   :  { %v1735_v62 = vld [vmem:[#allocation4 + $0x80c] sm:$0xf0] }
 0x12a   :  { %v1582_v63 = vor.u32 %v1735_v62, %v1581_v61 }
 0x12b   :  { %1041 = vmatpush.bf16.msrb.mxu3 %v1586_v59 }
 0x12d   :  { %v655_v4 = vpop.f32.mrf.mxu2 }
 0x12e   :  { %v668_v5 = vpop.f32.mrf.mxu3 }
 0x12f   :  { %1042 = vmatpush.bf16.msrb.mxu3 %v1582_v63 }
 0x130   :  { %v642_v8 = vpop.f32.mrf.mxu1  ;;  %v681_v9 = vpop.f32.mrf.mxu0 }
 0x131   :  { %v643_v10 = vadd.f32 %v642_v8, %v630_v7  ;;  %v682_v22 = vadd.f32 %v681_v9, %v297_v19  ;;  %v1625_v19 = vld [vmem:[#allocation4 + $0x960] sm:$0xf] }
 0x133   :  { %v656_v11 = vadd.f32 %v655_v4, %v643_v10  ;;  %v1733_v4 = vld [vmem:[#allocation4 + $0x7cc] sm:$0xf0]  ;;  %1043 = vmatpush.bf16.msrb.mxu3 %v1578_v2 }
 0x134   :  { %v1574_v6 = vor.u32 %v1733_v4, %v1573_v3 }
 0x135   :  { %v669_v12 = vadd.f32 %v668_v5, %v656_v11  ;;  %v657_v13 = vpop.f32.mrf.mxu2  ;;  %v1752_v5 = vld [vmem:[#allocation6 + $0x6] ss:$0 sm:$0xff] }
 0x136   :  { %v670_v14 = vpop.f32.mrf.mxu3  ;;  %v1569_v13 = vld [vmem:[#allocation4 + $0x7a0] sm:$0xf] }
 0x137   :  { %v724_v15 = vmax.f32 %v669_v12, 0.0  ;;  %1044 = vmatpush.bf16.msrb.mxu3 %v1574_v6  ;;  %v1732_v14 = vld [vmem:[#allocation4 + $0x7ac] sm:$0xf0] }
 0x138   :  { %v644_v16 = vpop.f32.mrf.mxu1  ;;  %v683_v17 = vpop.f32.mrf.mxu0 }
 0x139   :  { %v726_v18 = vpack.c.bf16 %v724_v15, %v724_v15  ;;  %v1570_v15 = vor.u32 %v1732_v14, %v1569_v13  ;;  %v1565_v16 = vld [vmem:[#allocation4 + $0x780] sm:$0xf]  ;;  %v1731_v17 = vld [vmem:[#allocation4 + $0x78c] sm:$0xf0] }
 0x13b   :  { %868 = vmatmul.bf16.vlgmr.msra.gmra.mxu0 %v726_v18  ;;  %1045 = vmatpush.bf16.msrb.mxu3 %v1570_v15  ;;  %v1566_v18 = vor.u32 %v1731_v17, %v1565_v16 }
 0x13d   :  { %v707_v20 = vpop.f32.mrf.mxu2 }
 0x13e   :  { %v720_v21 = vpop.f32.mrf.mxu3 }
 0x13f   :  { %1046 = vmatpush.bf16.msrb.mxu3 %v1566_v18 }
 0x140   :  { %v694_v23 = vpop.f32.mrf.mxu1 }
 0x141   :  { %v695_v24 = vadd.f32 %v694_v23, %v682_v22  ;;  %v1745_v23 = vld [vmem:[#allocation4 + $0x94c] sm:$0xf0] }
 0x143   :  { %v708_v25 = vadd.f32 %v707_v20, %v695_v24  ;;  %v1746_v20 = vld [vmem:[#allocation4 + $0x96c] sm:$0xf0] }
 0x144   :  { %v1626_v22 = vor.u32 %v1746_v20, %v1625_v19 }
 0x145   :  { %v721_v26 = vadd.f32 %v720_v21, %v708_v25  ;;  %v709_v27 = vpop.f32.mrf.mxu2  ;;  %v1621_v21 = vld [vmem:[#allocation4 + $0x940] sm:$0xf] }
 0x146   :  { %v722_v28 = vpop.f32.mrf.mxu3  ;;  %1122 = vmatpush.bf16.msrb.mxu0 %v1626_v22  ;;  %v1622_v24 = vor.u32 %v1745_v23, %v1621_v21  ;;  %v1617_v25 = vld [vmem:[#allocation4 + $0x920] sm:$0xf] }
 0x147   :  { %v725_v29 = vmax.f32 %v721_v26, 0.0  ;;  %v1744_v26 = vld [vmem:[#allocation4 + $0x92c] sm:$0xf0]  ;;  %v1613_v28 = vld [vmem:[#allocation4 + $0x900] sm:$0xf] }
 0x148   :  { %v696_v30 = vpop.f32.mrf.mxu1  ;;  %v1618_v27 = vor.u32 %v1744_v26, %v1617_v25 }
 0x149   :  { %v727_v31 = vpack.c.bf16 %v725_v29, %v725_v29  ;;  %v1743_v29 = vld [vmem:[#allocation4 + $0x90c] sm:$0xf0] }
 0x14a   :  { %1123 = vmatpush.bf16.msrb.mxu0 %v1622_v24  ;;  %v1614_v30 = vor.u32 %v1743_v29, %v1613_v28 }
 0x14b   :  { %881 = vmatmul.bf16.vlgmr.msra.gmra.mxu1 %v727_v31  ;;  %v1609_v31 = vld [vmem:[#allocation4 + $0x8e0] sm:$0xf] }
 0x14c   :  { %v1610_v33 = vor.u32 %v1742_v32, %v1609_v31 }
 0x14e   :  { %1124 = vmatpush.bf16.msrb.mxu0 %v1618_v27 }
 0x152   :  { %1125 = vmatpush.bf16.msrb.mxu0 %v1614_v30 }
 0x156   :  { %1126 = vmatpush.bf16.msrb.mxu0 %v1610_v33 }
 0x15a   :  { %1127 = vmatpush.bf16.msrb.mxu0 %v1606_v36 }
 0x15e   :  { %1128 = vmatpush.bf16.msrb.mxu0 %v1602_v45 }
 0x162   :  { %1129 = vmatpush.bf16.msrb.mxu0 %v1598_v48 }
 0x1b8   :  { %v869_v60 = vpop.f32.mrf.mxu0 }
 0x1b9   :  { %v870_v7 = vadd.f32 %v1752_v5, %v869_v60 }
 0x1c0   :  { %v871_v51 = vpop.f32.mrf.mxu0 }
 0x1c8   :  { %v882_v8 = vpop.f32.mrf.mxu1 }
 0x1c9   :  { %v883_v9 = vadd.f32 %v882_v8, %v870_v7 }
 0x1cb   :  { %v886_v10 = vmax.f32 %v883_v9, 0.0 }
 0x1cd   :  { %v887_v11 = vpack.c.bf16 %v886_v10, %v886_v10 }
 0x1cf   :  { %964 = vmatmul.bf16.vlgmr.msrb.gmra.mxu2 %v887_v11 }
 0x1d0   :  { %v884_v12 = vpop.f32.mrf.mxu1 }
 0x252   :  { %v965_v38 = vpop.f32.mrf.mxu2 }
 0x253   :  { %v966_v39 = vadd.f32 %v1753_v37, %v965_v38 }
 0x255   :  { %v969_v40 = vmax.f32 %v966_v39, 0.0 }
 0x257   :  { %v970_v41 = vpack.c.bf16 %v969_v40, %v969_v40 }
 0x259   :  { %1047 = vmatmul.bf16.vlgmr.msrb.gmra.mxu3 %v970_v41 }
 0x25a   :  { %v967_v42 = vpop.f32.mrf.mxu2 }
 0x2dc   :  { %v1048_v50 = vpop.f32.mrf.mxu3 }
 0x2dd   :  { %v1049_v52 = vadd.f32 %v1754_v49, %v1048_v50 }
 0x2df   :  { %v1052_v53 = vmax.f32 %v1049_v52, 0.0 }
 0x2e1   :  { %v1053_v54 = vpack.c.bf16 %v1052_v53, %v1052_v53 }
 0x2e3   :  { %1130 = vmatmul.bf16.vlgmr.msrb.gmra.mxu0 %v1053_v54 }
 0x2e4   :  { %v1050_v55 = vpop.f32.mrf.mxu3 }
 0x360   :  { %v1131_v57 = vpop.f32.mrf.mxu0 }
 0x361   :  { %v1132_v58 = vadd.f32 %v1755_v56, %v1131_v57 }
 0x363   :  { %v1135_v59 = vpack.c.bf16 %v1132_v58, %v1132_v58 }
 0x365   :  { %1136 = vst [vmem:[%s1882_s3] sm:$0xf] %v1135_v59 }
 0x368   :  { %v1133_v60 = vpop.f32.mrf.mxu0 }
 0x369   :  { %1141 = vsyncpa [#allocation3], 1 }
 0x36a   :  { %1142 = vsyncpa [#allocation5], 1 }

</bundles_post_ra>
